<compile_context>
chip_gen: v7x
topology: tpu7x:2x2x1
jax: 0.10.0
libtpu: 0.0.40
codegen_flags: <defaults>
</compile_context>

<pallas_src>
import functools

import jax
import jax.numpy as jnp
from jax.experimental import pallas as pl
from jax.experimental.pallas import tpu as pltpu


def _round_up(n, m):
    return ((n + m - 1) // m) * m


def actor_kernel(x_ref, w_ref, b_ref, o_ref, *, state_dim, seg, width, action_dim):
    """One batch tile of the 4-layer MLP.

    x_ref : [tm, state_dim] f32
    w_ref : [seg + 3*width, width] bf16 packed slab
            rows [0, state_dim)          = W1 (out zero-padded to `width`)
            rows [seg, seg+width)        = W2 (in/out zero-padded)
            rows [seg+width, seg+2w)     = W3
            rows [seg+2w, seg+3w)        = W4 (out zero-padded)
    b_ref : [8, width] f32, rows 0..3 = b1..b4 (zero-padded lanes)
    o_ref : [tm, action_dim] f32
    """
    o2 = seg
    o3 = seg + width
    o4 = seg + 2 * width

    x = x_ref[...].astype(jnp.bfloat16)

    h = jnp.dot(x, w_ref[0:state_dim, :],
                preferred_element_type=jnp.float32) + b_ref[0:1, :]
    h = jnp.maximum(h, 0.0)

    h = jnp.dot(h.astype(jnp.bfloat16), w_ref[o2:o2 + width, :],
                preferred_element_type=jnp.float32) + b_ref[1:2, :]
    h = jnp.maximum(h, 0.0)

    h = jnp.dot(h.astype(jnp.bfloat16), w_ref[o3:o3 + width, :],
                preferred_element_type=jnp.float32) + b_ref[2:3, :]
    h = jnp.maximum(h, 0.0)

    h = jnp.dot(h.astype(jnp.bfloat16), w_ref[o4:o4 + width, :],
                preferred_element_type=jnp.float32) + b_ref[3:4, :]

    # fc4 has no activation in the PyTorch Actor.forward (no tanh / scaling).
    o_ref[...] = h[:, :action_dim].astype(o_ref.dtype)


def _pack_params(params):
    """Pack (W,b) pairs into one bf16 weight slab and one f32 bias slab."""
    (w1, b1), (w2, b2), (w3, b3), (w4, b4) = params
    state_dim = w1.shape[0]
    outs = (w1.shape[1], w2.shape[1], w3.shape[1], w4.shape[1])
    action_dim = outs[-1]

    width = _round_up(max(outs), 128)      # lane-dense intermediate width
    r1 = _round_up(state_dim, 16)          # bf16 sublane-aligned first segment
    rows = r1 + 3 * width

    w_slab = jnp.zeros((rows, width), jnp.float32)
    w_slab = w_slab.at[:state_dim, :outs[0]].set(w1)
    w_slab = w_slab.at[r1:r1 + w2.shape[0], :outs[1]].set(w2)
    w_slab = w_slab.at[r1 + width:r1 + width + w3.shape[0], :outs[2]].set(w3)
    w_slab = w_slab.at[r1 + 2 * width:r1 + 2 * width + w4.shape[0], :outs[3]].set(w4)
    w_slab = w_slab.astype(jnp.bfloat16)

    b_slab = jnp.zeros((8, width), jnp.float32)
    b_slab = b_slab.at[0, :outs[0]].set(b1.reshape(-1))
    b_slab = b_slab.at[1, :outs[1]].set(b2.reshape(-1))
    b_slab = b_slab.at[2, :outs[2]].set(b3.reshape(-1))
    b_slab = b_slab.at[3, :outs[3]].set(b4.reshape(-1))

    return w_slab, b_slab, state_dim, r1, width, action_dim


def actor_forward(x, params, *, tile_m=2048):
    """x: [batch, state_dim] f32.  params: list of (W[in,out], b[1,out]) f32."""
    batch, state_dim = x.shape
    w_slab, b_slab, sd, r1, width, action_dim = _pack_params(params)
    assert sd == state_dim

    # Only pad the batch to a sublane multiple (<= 7 extra rows); no tile-sized
    # padding pass — the grid uses cdiv and Pallas clips the edge block.
    padded = _round_up(batch, 8)
    if padded != batch:
        x = jnp.pad(x, ((0, padded - batch), (0, 0)))

    tm = min(tile_m, padded)
    # v7x megacore: keep >= 2 grid steps when there is enough batch to split,
    # so the "parallel" axis can shard across both TensorCores.
    if pl.cdiv(padded, tm) == 1 and padded >= 256:
        tm = _round_up(pl.cdiv(padded, 2), 8)
    grid = (pl.cdiv(padded, tm),)

    kernel = functools.partial(
        actor_kernel, state_dim=state_dim, seg=r1, width=width,
        action_dim=action_dim)

    out = pl.pallas_call(
        kernel,
        grid=grid,
        in_specs=[
            pl.BlockSpec((tm, state_dim), lambda i: (i, 0)),   # x: tiled over batch
            pl.BlockSpec(w_slab.shape, lambda i: (0, 0)),      # weight slab: resident
            pl.BlockSpec(b_slab.shape, lambda i: (0, 0)),      # bias slab: resident
        ],
        # Unpadded output: last block dim == full array dim (legal); HBM
        # writeback is only action_dim*4 bytes per row.
        out_specs=pl.BlockSpec((tm, action_dim), lambda i: (i, 0)),
        out_shape=jax.ShapeDtypeStruct((padded, action_dim), jnp.float32),
        compiler_params=pltpu.CompilerParams(
            dimension_semantics=("parallel",),
            vmem_limit_bytes=32 * 1024 * 1024,   # safe on v5e/v6e/v7x
        ),
    )(x, w_slab, b_slab)

    return out if padded == batch else out[:batch]


def init_actor_params(key, state_dim, action_dim, hidden_dim=64):
    """nn.Linear-style U(-1/sqrt(fan_in), 1/sqrt(fan_in)) init.
    Weights stored as [in_features, out_features] (already transposed)."""
    dims = [(state_dim, hidden_dim),
            (hidden_dim, hidden_dim * 2),
            (hidden_dim * 2, hidden_dim),
            (hidden_dim, action_dim)]
    params = []
    for fan_in, fan_out in dims:
        key, kw, kb = jax.random.split(key, 3)
        bound = 1.0 / jnp.sqrt(jnp.float32(fan_in))
        w = jax.random.uniform(kw, (fan_in, fan_out), jnp.float32, -bound, bound)
        b = jax.random.uniform(kb, (1, fan_out), jnp.float32, -bound, bound)
        params.append((w, b))
    return params


def actor_reference_bf16(x, params):
    """Pure-JAX reference mirroring the kernel's bf16-weight / f32-accumulate math."""
    h = x
    for i, (w, b) in enumerate(params):
        h = jnp.dot(h.astype(jnp.bfloat16), w.astype(jnp.bfloat16),
                    preferred_element_type=jnp.float32) + b
        if i < len(params) - 1:
            h = jnp.maximum(h, 0.0)
    return h


def actor_reference_f32(x, params):
    """Exact f32 math of the PyTorch module (for a looser sanity check)."""
    h = x
    for i, (w, b) in enumerate(params):
        h = h @ w + b
        if i < len(params) - 1:
            h = jnp.maximum(h, 0.0)
    return h


if __name__ == "__main__":
    key = jax.random.PRNGKey(0)
    k_x, k_p = jax.random.split(key)

    batch, state_dim, action_dim, hidden_dim = 2, 8, 4, 64
    x = jax.random.normal(k_x, (batch, state_dim), jnp.float32)
    params = init_actor_params(k_p, state_dim, action_dim, hidden_dim)

    out = jax.jit(actor_forward)(x, params)
    out = jax.block_until_ready(out)

    assert out.shape == (batch, action_dim)

    ref = actor_reference_bf16(x, params)
    assert jnp.allclose(out, ref, atol=1e-3, rtol=1e-3), "mismatch vs bf16 reference"

    # bf16 weight rounding vs. the true f32 PyTorch math stays small.
    ref32 = actor_reference_f32(x, params)
    assert jnp.allclose(out, ref32, atol=5e-2, rtol=5e-2), "mismatch vs f32 reference"

    print("KERNEL_OK")
</pallas_src>

<mosaic_0001>
module attributes {stable_mosaic.version = 11 : i64} {
  func.func @actor_kernel(%arg0: i32, %arg1: memref<8x8xf32, #tpu.memory_space<vmem>>, %arg2: memref<400x128xbf16, #tpu.memory_space<vmem>>, %arg3: memref<8x128xf32, #tpu.memory_space<vmem>>, %arg4: memref<8x4xf32, #tpu.memory_space<vmem>>) attributes {dimension_semantics = [#tpu.dimension_semantics<parallel>], iteration_bounds = array<i64: 1>, scalar_prefetch = 0 : i64, scratch_operands = 0 : i64, tpu.core_type = #tpu.core_type<tc>, window_params = [{transform_indices = @transform_0, window_bounds = array<i64: 8, 8>}, {pipeline_mode = #tpu.pipeline_mode<synchronous>, transform_indices = @transform_1, window_bounds = array<i64: 400, 128>}, {pipeline_mode = #tpu.pipeline_mode<synchronous>, transform_indices = @transform_2, window_bounds = array<i64: 8, 128>}, {transform_indices = @transform_3, window_bounds = array<i64: 8, 4>}]} {
    %c0 = arith.constant 0 : index
    %c0_0 = arith.constant 0 : index
    %0 = vector.load %arg1[%c0, %c0_0] : memref<8x8xf32, #tpu.memory_space<vmem>>, vector<8x8xf32>
    %1 = arith.truncf %0 : vector<8x8xf32> to vector<8x8xbf16>
    %c0_1 = arith.constant 0 : index
    %c0_2 = arith.constant 0 : index
    %2 = vector.load %arg2[%c0_1, %c0_2] : memref<400x128xbf16, #tpu.memory_space<vmem>>, vector<8x128xbf16>
    %cst = arith.constant dense<0.000000e+00> : vector<8x128xf32>
    %3 = tpu.matmul %1, %2, %cst {dimension_numbers = #tpu.dot_dimension_numbers<[1], [0], [0], [1], [0, 0, 1, 1], [], []>} : vector<8x8xbf16>, vector<8x128xbf16>, vector<8x128xf32> -> vector<8x128xf32>
    %c0_3 = arith.constant 0 : index
    %c0_4 = arith.constant 0 : index
    %4 = vector.load %arg3[%c0_3, %c0_4] : memref<8x128xf32, #tpu.memory_space<vmem>>, vector<1x128xf32>
    %5 = vector.broadcast %4 : vector<1x128xf32> to vector<8x128xf32>
    %6 = arith.addf %3, %5 : vector<8x128xf32>
    %cst_5 = arith.constant 0.000000e+00 : f32
    %7 = vector.broadcast %cst_5 : f32 to vector<8x128xf32>
    %8 = arith.maximumf %6, %7 : vector<8x128xf32>
    %9 = arith.truncf %8 : vector<8x128xf32> to vector<8x128xbf16>
    %c16 = arith.constant 16 : index
    %c0_6 = arith.constant 0 : index
    %10 = vector.load %arg2[%c16, %c0_6] : memref<400x128xbf16, #tpu.memory_space<vmem>>, vector<128x128xbf16>
    %cst_7 = arith.constant dense<0.000000e+00> : vector<8x128xf32>
    %11 = tpu.matmul %9, %10, %cst_7 {dimension_numbers = #tpu.dot_dimension_numbers<[1], [0], [0], [1], [0, 0, 1, 1], [], []>} : vector<8x128xbf16>, vector<128x128xbf16>, vector<8x128xf32> -> vector<8x128xf32>
    %c1 = arith.constant 1 : index
    %c0_8 = arith.constant 0 : index
    %12 = vector.load %arg3[%c1, %c0_8] : memref<8x128xf32, #tpu.memory_space<vmem>>, vector<1x128xf32>
    %13 = vector.broadcast %12 : vector<1x128xf32> to vector<8x128xf32>
    %14 = arith.addf %11, %13 : vector<8x128xf32>
    %cst_9 = arith.constant 0.000000e+00 : f32
    %15 = vector.broadcast %cst_9 : f32 to vector<8x128xf32>
    %16 = arith.maximumf %14, %15 : vector<8x128xf32>
    %17 = arith.truncf %16 : vector<8x128xf32> to vector<8x128xbf16>
    %c144 = arith.constant 144 : index
    %c0_10 = arith.constant 0 : index
    %18 = vector.load %arg2[%c144, %c0_10] : memref<400x128xbf16, #tpu.memory_space<vmem>>, vector<128x128xbf16>
    %cst_11 = arith.constant dense<0.000000e+00> : vector<8x128xf32>
    %19 = tpu.matmul %17, %18, %cst_11 {dimension_numbers = #tpu.dot_dimension_numbers<[1], [0], [0], [1], [0, 0, 1, 1], [], []>} : vector<8x128xbf16>, vector<128x128xbf16>, vector<8x128xf32> -> vector<8x128xf32>
    %c2 = arith.constant 2 : index
    %c0_12 = arith.constant 0 : index
    %20 = vector.load %arg3[%c2, %c0_12] : memref<8x128xf32, #tpu.memory_space<vmem>>, vector<1x128xf32>
    %21 = vector.broadcast %20 : vector<1x128xf32> to vector<8x128xf32>
    %22 = arith.addf %19, %21 : vector<8x128xf32>
    %cst_13 = arith.constant 0.000000e+00 : f32
    %23 = vector.broadcast %cst_13 : f32 to vector<8x128xf32>
    %24 = arith.maximumf %22, %23 : vector<8x128xf32>
    %25 = arith.truncf %24 : vector<8x128xf32> to vector<8x128xbf16>
    %c272 = arith.constant 272 : index
    %c0_14 = arith.constant 0 : index
    %26 = vector.load %arg2[%c272, %c0_14] : memref<400x128xbf16, #tpu.memory_space<vmem>>, vector<128x128xbf16>
    %cst_15 = arith.constant dense<0.000000e+00> : vector<8x128xf32>
    %27 = tpu.matmul %25, %26, %cst_15 {dimension_numbers = #tpu.dot_dimension_numbers<[1], [0], [0], [1], [0, 0, 1, 1], [], []>} : vector<8x128xbf16>, vector<128x128xbf16>, vector<8x128xf32> -> vector<8x128xf32>
    %c3 = arith.constant 3 : index
    %c0_16 = arith.constant 0 : index
    %28 = vector.load %arg3[%c3, %c0_16] : memref<8x128xf32, #tpu.memory_space<vmem>>, vector<1x128xf32>
    %29 = vector.broadcast %28 : vector<1x128xf32> to vector<8x128xf32>
    %30 = arith.addf %27, %29 : vector<8x128xf32>
    %31 = vector.extract_strided_slice %30 {offsets = [0, 0], sizes = [8, 4], strides = [1, 1]} : vector<8x128xf32> to vector<8x4xf32>
    %c0_17 = arith.constant 0 : index
    %c0_18 = arith.constant 0 : index
    %32 = vector.load %arg4[%c0_17, %c0_18] : memref<8x4xf32, #tpu.memory_space<vmem>>, vector<8x4xf32>
    tpu.vector_store %arg4[%c0_17, %c0_18], %31 {strides = array<i32>} : memref<8x4xf32, #tpu.memory_space<vmem>>, vector<8x4xf32>,
    return
  }
  func.func @transform_0(%arg0: i32) -> (i32, i32) {
    %c0_i32 = arith.constant 0 : i32
    %c0_i32_0 = arith.constant 0 : i32
    return %arg0, %c0_i32 : i32, i32
  }
  func.func @transform_1(%arg0: i32) -> (i32, i32) {
    %c0_i32 = arith.constant 0 : i32
    %c0_i32_0 = arith.constant 0 : i32
    %c0_i32_1 = arith.constant 0 : i32
    return %c0_i32, %c0_i32_0 : i32, i32
  }
  func.func @transform_2(%arg0: i32) -> (i32, i32) {
    %c0_i32 = arith.constant 0 : i32
    %c0_i32_0 = arith.constant 0 : i32
    %c0_i32_1 = arith.constant 0 : i32
    return %c0_i32, %c0_i32_0 : i32, i32
  }
  func.func @transform_3(%arg0: i32) -> (i32, i32) {
    %c0_i32 = arith.constant 0 : i32
    %c0_i32_0 = arith.constant 0 : i32
    return %arg0, %c0_i32 : i32, i32
  }
}

</mosaic_0001>

<bundles_post_ra>
// kernel: actor_forward.1
= control target key start
LH: loop header
LB: loop body
LE: loop exit
PB: predicated region body
PF: predicated region fallthrough
CT: control target
= control target key end

     0   :  { %vm27_vm0 = vcmask 1043456   ;;  %v560_v0 = vmov 0.0   ;;  %vm561_vm1 = vmmov 0   ;;  %vm23_vm2 = vcmask 64512   ;;  %s708_s1 = inlined_call_operand.vmem [shape: bf16[400,128], index: 1, kind: input, shape index: {}]   ;;  %s709_s0 = inlined_call_operand.vmem [shape: f32[8,8], index: 0, kind: input, shape index: {}]   ;;  %s710_s2 = inlined_call_operand.vmem [shape: f32[8,128], index: 2, kind: input, shape index: {}]   ;;  %s711_s3 = inlined_call_operand.vmem [shape: f32[8,4], index: 3, kind: output, shape index: {}]  }
   0x1   :  { %468 = vmatprep.subr.bf16.mxu0 %v560_v0  ;;  %v17_v1 = vld [vmem:[%s708_s1] sm:$0xf]  ;;  %470 = vmatprep.mubr.msk.bf16.mxu0 %vm561_vm1, %v560_v0  ;;  %v536_v5 = vld [vmem:[%s708_s1 + $0x8] sm:$0xff]   ;;  %v537_v6 = vld [vmem:[%s708_s1 + $0x10] sm:$0xff]   ;;  %vm404_vm3 = vcmask 31744  }
   0x2   :  { %v15_v2 = vld [vmem:[%s709_s0] sm:$0xff]  ;;  %v29_v3 = vsel %vm27_vm0, %v17_v1, 0  ;;  %474 = vmatprep.subr.bf16.mxu1 %v560_v0  ;;  %490 = vmatprep.mubr.msk.bf16.mxu1 %vm561_vm1, %v560_v0  ;;  %v538_v7 = vld [vmem:[%s708_s1 + $0x18] sm:$0xff]   ;;  %v540_v9 = vld [vmem:[%s708_s1 + $0x28] sm:$0xff]  }
   0x3   :  { %v16_v4 = vpack.c.bf16 %v15_v2, %v15_v2  ;;  %469 = vmatpush3.bf16.msra.mxu0 %v29_v3  ;;  %475 = vmatpush3.bf16.msra.mxu1 %v536_v5  ;;  %v539_v8 = vld [vmem:[%s708_s1 + $0x20] sm:$0xff]   ;;  %v541_v10 = vld [vmem:[%s708_s1 + $0x30] sm:$0xff]   ;;  %v542_v11 = vld [vmem:[%s708_s1 + $0x38] sm:$0xff]  }
   0x4   :  { %494 = vmatprep.subr.bf16.mxu0 %v560_v0  ;;  %476 = vmatprep.subr.bf16.mxu1 %v560_v0  ;;  %v543_v12 = vld [vmem:[%s708_s1 + $0x40] sm:$0xff]   ;;  %v544_v13 = vld [vmem:[%s708_s1 + $0x48] sm:$0xff]   ;;  %v545_v14 = vld [vmem:[%s708_s1 + $0x50] sm:$0xff]  }
   0x5   :  { %v546_v15 = vld [vmem:[%s708_s1 + $0x58] sm:$0xff]   ;;  %v547_v16 = vld [vmem:[%s708_s1 + $0x60] sm:$0xff]   ;;  %v548_v17 = vld [vmem:[%s708_s1 + $0x68] sm:$0xff]  }
   0x6   :  { %471 = vmatmul.mubr.msk.bf16.vlgmr.msra.gmra.mrb[0].mxu0 %vm23_vm2, %v16_v4  ;;  %v549_v18 = vld [vmem:[%s708_s1 + $0x70] sm:$0xff]   ;;  %v410_v19 = vld [vmem:[%s710_s2] ss:$0 sm:$0xff]  ;;  %v550_v27 = vld [vmem:[%s708_s1 + $0x78] sm:$0xff]  }
   0x7   :  { %510 = vmatprep.mubr.msk.bf16.mxu0 %vm561_vm1, %v560_v0  ;;  %477 = vmatpush3.bf16.msra.mxu1 %v537_v6  ;;  %v551_v28 = vld [vmem:[%s708_s1 + $0x80] sm:$0xff]   ;;  %v552_v29 = vld [vmem:[%s708_s1 + $0x88] sm:$0xff]   ;;  %v553_v30 = vld [vmem:[%s708_s1 + $0x90] sm:$0xff]  }
   0x8   :  { %478 = vmatprep.subr.bf16.mxu1 %v560_v0  ;;  %495 = vmatpush3.bf16.msra.mxu0 %v544_v13  ;;  %v554_v31 = vld [vmem:[%s708_s1 + $0x98] sm:$0xff]   ;;  %v555_v32 = vld [vmem:[%s708_s1 + $0xa0] sm:$0xff]   ;;  %v556_v33 = vld [vmem:[%s708_s1 + $0xa8] sm:$0xff]  }
   0x9   :  { %496 = vmatprep.subr.bf16.mxu0 %v560_v0  ;;  %v557_v34 = vld [vmem:[%s708_s1 + $0xb0] sm:$0xff]   ;;  %v412_v35 = vld [vmem:[%s710_s2 + $0x1] ss:$0 sm:$0xff]  ;;  %v558_v43 = vld [vmem:[%s708_s1 + $0xb8] sm:$0xff]  }
   0xa   :  { %v559_v44 = vld [vmem:[%s708_s1 + $0xc0] sm:$0xff]  }
   0xb   :  { %479 = vmatpush3.bf16.msra.mxu1 %v538_v7  ;;  %v421_v45 = vld [vmem:[%s710_s2 + $0x2] ss:$0 sm:$0xff]  ;;  %v430_v53 = vld [vmem:[%s710_s2 + $0x3] ss:$0 sm:$0xff] }
   0xc   :  { %480 = vmatprep.subr.bf16.mxu1 %v560_v0  ;;  %497 = vmatpush3.bf16.msra.mxu0 %v545_v14 }
   0xd   :  { %498 = vmatprep.subr.bf16.mxu0 %v560_v0 }
   0xf   :  { %481 = vmatpush3.bf16.msra.mxu1 %v539_v8 }
  0x10   :  { %482 = vmatprep.subr.bf16.mxu1 %v560_v0  ;;  %499 = vmatpush3.bf16.msra.mxu0 %v546_v15 }
  0x11   :  { %500 = vmatprep.subr.bf16.mxu0 %v560_v0 }
  0x13   :  { %483 = vmatpush3.bf16.msra.mxu1 %v540_v9 }
  0x14   :  { %484 = vmatprep.subr.bf16.mxu1 %v560_v0  ;;  %501 = vmatpush3.bf16.msra.mxu0 %v547_v16 }
  0x15   :  { %502 = vmatprep.subr.bf16.mxu0 %v560_v0 }
  0x17   :  { %485 = vmatpush3.bf16.msra.mxu1 %v541_v10 }
  0x18   :  { %486 = vmatprep.subr.bf16.mxu1 %v560_v0  ;;  %503 = vmatpush3.bf16.msra.mxu0 %v548_v17 }
  0x19   :  { %504 = vmatprep.subr.bf16.mxu0 %v560_v0 }
  0x1b   :  { %487 = vmatpush3.bf16.msra.mxu1 %v542_v11 }
  0x1c   :  { %488 = vmatprep.subr.bf16.mxu1 %v560_v0  ;;  %505 = vmatpush3.bf16.msra.mxu0 %v549_v18 }
  0x1d   :  { %506 = vmatprep.subr.bf16.mxu0 %v560_v0 }
  0x1f   :  { %489 = vmatpush3.bf16.msra.mxu1 %v543_v12 }
  0x20   :  { %514 = vmatprep.subr.bf16.mxu1 %v560_v0  ;;  %507 = vmatpush3.bf16.msra.mxu0 %v550_v27 }
  0x21   :  { %508 = vmatprep.subr.bf16.mxu0 %v560_v0 }
  0x24   :  { %509 = vmatpush3.bf16.msra.mxu0 %v551_v28 }
  0xd9   :  { %v65_v20 = vpop.f32.mrb[0].mxu0 }
  0xda   :  { %v66_v21 = vadd.f32 %v410_v19, %v65_v20  ;;  %v472_v22 = vpop.f32.mrb[1].mxu0 }
  0xdb   :  { %v68_v23 = vpop.f32.mrb[2].mxu0 }
  0xdc   :  { %v71_v24 = vmax.f32 %v66_v21, 0.0  ;;  %v473_v25 = vpop.f32.mrb[3].mxu0 }
  0xde   :  { %v72_v26 = vpack.c.bf16 %v71_v24, %v71_v24 }
  0xe0   :  { %491 = vmatmul.mubr.bf16.vlgmr.msra.gmra.mrb[0].mxu1 %v72_v26 }
  0xe1   :  { %530 = vmatprep.mubr.msk.bf16.mxu1 %vm561_vm1, %v560_v0  ;;  %515 = vmatpush3.bf16.msra.mxu1 %v552_v29 }
  0xe2   :  { %516 = vmatprep.subr.bf16.mxu1 %v560_v0 }
  0xe5   :  { %517 = vmatpush3.bf16.msra.mxu1 %v553_v30 }
  0xe6   :  { %518 = vmatprep.subr.bf16.mxu1 %v560_v0 }
  0xe9   :  { %519 = vmatpush3.bf16.msra.mxu1 %v554_v31 }
  0xea   :  { %520 = vmatprep.subr.bf16.mxu1 %v560_v0 }
  0xed   :  { %521 = vmatpush3.bf16.msra.mxu1 %v555_v32 }
  0xee   :  { %522 = vmatprep.subr.bf16.mxu1 %v560_v0 }
  0xf1   :  { %523 = vmatpush3.bf16.msra.mxu1 %v556_v33 }
  0xf2   :  { %524 = vmatprep.subr.bf16.mxu1 %v560_v0 }
  0xf5   :  { %525 = vmatpush3.bf16.msra.mxu1 %v557_v34 }
  0xf6   :  { %526 = vmatprep.subr.bf16.mxu1 %v560_v0 }
  0xf9   :  { %527 = vmatpush3.bf16.msra.mxu1 %v558_v43 }
  0xfa   :  { %528 = vmatprep.subr.bf16.mxu1 %v560_v0 }
  0xfd   :  { %529 = vmatpush3.bf16.msra.mxu1 %v559_v44 }
 0x1b3   :  { %v176_v36 = vpop.f32.mrb[0].mxu1 }
 0x1b4   :  { %v177_v37 = vadd.f32 %v412_v35, %v176_v36  ;;  %v492_v38 = vpop.f32.mrb[1].mxu1 }
 0x1b5   :  { %v179_v39 = vpop.f32.mrb[2].mxu1 }
 0x1b6   :  { %v182_v40 = vmax.f32 %v177_v37, 0.0  ;;  %v493_v41 = vpop.f32.mrb[3].mxu1 }
 0x1b8   :  { %v183_v42 = vpack.c.bf16 %v182_v40, %v182_v40 }
 0x1ba   :  { %511 = vmatmul.mubr.bf16.vlgmr.msra.gmra.mrb[4].mxu0 %v183_v42 }
 0x28d   :  { %v287_v46 = vpop.f32.mrb[4].mxu0 }
 0x28e   :  { %v288_v47 = vadd.f32 %v421_v45, %v287_v46  ;;  %v512_v48 = vpop.f32.mrb[5].mxu0 }
 0x28f   :  { %v290_v49 = vpop.f32.mrb[6].mxu0 }
 0x290   :  { %v293_v50 = vmax.f32 %v288_v47, 0.0  ;;  %v513_v51 = vpop.f32.mrb[7].mxu0 }
 0x292   :  { %v294_v52 = vpack.c.bf16 %v293_v50, %v293_v50 }
 0x294   :  { %531 = vmatmul.mubr.bf16.vlgmr.msra.gmra.mrb[4].mxu1 %v294_v52 }
 0x367   :  { %v398_v54 = vpop.f32.mrb[4].mxu1 }
 0x368   :  { %v399_v55 = vadd.f32 %v430_v53, %v398_v54  ;;  %v532_v56 = vpop.f32.mrb[5].mxu1 }
 0x369   :  { %v401_v57 = vpop.f32.mrb[6].mxu1 }
 0x36a   :  { %405 = vst.msk [vmem:[%s711_s3] sm:$0xff] %vm404_vm3, %v399_v55  ;;  %v533_v58 = vpop.f32.mrb[7].mxu1 }

</bundles_post_ra>
